<compile_context>
chip_gen: v7x
topology: tpu7x:2x2x1
jax: 0.10.0
libtpu: 0.0.40
codegen_flags: <defaults>
</compile_context>

<pallas_src>
import functools
import math

import jax
import jax.numpy as jnp
from jax.experimental import pallas as pl
from jax.experimental.pallas import tpu as pltpu

N_HEAD = 4
LN_EPS = 1e-5          # PyTorch LayerNorm default eps
NEG_INF = -1e30        # finite "minus infinity"; representable in bf16


def _layer_norm(x, w, b):
    mu = jnp.mean(x, axis=-1, keepdims=True)
    var = jnp.mean(jnp.square(x - mu), axis=-1, keepdims=True)
    return (x - mu) * jax.lax.rsqrt(var + LN_EPS) * w + b


def _gelu_tanh(x):
    # GPT-2 style tanh-approximate GELU (EUP tanh inside the kernel).
    # TODO(synk): exact erf-GELU if nn.GELU() (erf form) must be matched bit-for-bit.
    c = math.sqrt(2.0 / math.pi)
    return 0.5 * x * (1.0 + jnp.tanh(c * (x + 0.044715 * x * x * x)))


# ----------------------------------------------------------------------------
# Kernel: one invocation over ALL tokens.  x_ref is (N, D) with N = B*T.
#   p_ref : (8, 128) f32   rows: ln1_w, ln1_b, ln2_w, ln2_b,
#                                b_qkv(head-interleaved, q pre-scaled),
#                                b_attn_proj, b_fc, b_mlp_proj
#   w_ref : (7D+M, 128) bf16 rows: [0,D) c_attn W (head-interleaved, q scaled)
#                                  [D,2D) mlp c_fc W
#                                  [2D,6D) mlp c_proj W
#                                  [6D,7D) attn c_proj W
#                                  [7D,7D+M) additive attention mask (0/-1e30)
# ----------------------------------------------------------------------------
def block_kernel(x_ref, p_ref, w_ref, o_ref, *, n_head):
    x = x_ref[...]                               # (N, D) f32
    N, D = x.shape
    hd = D // n_head
    M = n_head * N                               # head-packed row count
    qkv_r, fc_r, mp_r, ao_r, mask_r = 0, D, 2 * D, 6 * D, 7 * D

    ln1_w, ln1_b = p_ref[0:1, 0:D], p_ref[1:2, 0:D]
    ln2_w, ln2_b = p_ref[2:3, 0:D], p_ref[3:4, 0:D]
    b_qkv, b_ao = p_ref[4:5, :], p_ref[5:6, :]
    b_fc, b_mp = p_ref[6:7, :], p_ref[7:8, :]

    # ---------- attention branch: x + c_proj(softmax(q k^T / sqrt(hd)) v) ----
    h = _layer_norm(x, ln1_w, ln1_b)
    # qkv weight columns are head-interleaved ([q_h|k_h|v_h] blocks of hd lanes
    # per head); the 1/sqrt(hd) scale is folded into the q columns at prepare.
    qkv = jnp.dot(h.astype(jnp.bfloat16), w_ref[qkv_r:qkv_r + D, :],
                  preferred_element_type=jnp.float32) + b_qkv       # (N, 128)

    # Head pack: (N, H*3hd) -> (H*N, 3hd) — one sublane concat of 4 lane slices.
    step = 3 * hd
    qkvh = jnp.concatenate(
        [qkv[:, hh * step:(hh + 1) * step] for hh in range(n_head)], axis=0)
    qh = qkvh[:, 0:hd]                           # (M, hd) f32, pre-scaled
    kh = qkvh[:, hd:2 * hd]                      # (M, hd) f32
    vh = qkvh[:, 2 * hd:3 * hd].astype(jnp.bfloat16)

    # One (M, M) score matmul for every head/batch; the precomputed additive
    # mask (0 / -1e30) removes cross-head / cross-batch / non-causal entries.
    s = jnp.dot(qh, kh.T, preferred_element_type=jnp.float32)       # (M, M)
    s = s + w_ref[mask_r:mask_r + M, 0:M].astype(jnp.float32)
    s = s - jnp.max(s, axis=-1, keepdims=True)
    p = jnp.exp(s)
    p = p * pl.reciprocal(jnp.sum(p, axis=-1, keepdims=True), approx=True)
    oh = jnp.dot(p.astype(jnp.bfloat16), vh,
                 preferred_element_type=jnp.float32)                # (M, hd)

    # Head unpack: (H*N, hd) -> (N, D) — one lane concat of 4 sublane slices.
    attn = jnp.concatenate(
        [oh[hh * N:(hh + 1) * N, :] for hh in range(n_head)], axis=1)
    attn = jnp.dot(attn.astype(jnp.bfloat16), w_ref[ao_r:ao_r + D, :],
                   preferred_element_type=jnp.float32) + b_ao       # (N, 128)
    x = x + attn[:, 0:D]

    # ---------- MLP branch: x + c_proj(gelu(c_fc(ln_2(x)))) -------------------
    h2 = _layer_norm(x, ln2_w, ln2_b)
    ff = jnp.dot(h2.astype(jnp.bfloat16), w_ref[fc_r:fc_r + D, :],
                 preferred_element_type=jnp.float32) + b_fc         # (N, 128)
    ff = _gelu_tanh(ff)
    out = jnp.dot(ff[:, 0:4 * D].astype(jnp.bfloat16),
                  w_ref[mp_r:mp_r + 4 * D, :],
                  preferred_element_type=jnp.float32) + b_mp        # (N, 128)
    # TODO(synk): write a lane-dense (rows, 128) output slab once T*D grows;
    # at (16, 32) the masked partial stores are 2 vst.msk ops.
    o_ref[...] = (x + out[:, 0:D]).astype(o_ref.dtype)


@functools.partial(jax.jit, static_argnames=("n_head",))
def block_forward(x, p_pack, w_slab, *, n_head=N_HEAD):
    """x: (B, T, D) f32.  p_pack / w_slab come from prepare_params (run once)."""
    B, T, D = x.shape
    N = B * T
    kernel = functools.partial(block_kernel, n_head=n_head)

    def full(shape):
        return pl.BlockSpec(shape, lambda i: (0, 0))

    # Single grid step: the whole flattened batch fits in one invocation and the
    # whole working set (~80 KiB) is trivial vs. VMEM on v5e/v6e (128 MiB) and
    # v7x (64 MiB).  On v7x, once B*T grows past ~1-2k tokens of work, switch to
    # grid=(2,) split over batch with dimension_semantics=("parallel",) to use
    # both TensorCores (each core re-DMAs the weight slab).
    y = pl.pallas_call(
        kernel,
        out_shape=jax.ShapeDtypeStruct((N, D), x.dtype),
        grid=(1,),
        in_specs=[full((N, D)), full(p_pack.shape), full(w_slab.shape)],
        out_specs=full((N, D)),
        compiler_params=pltpu.CompilerParams(dimension_semantics=("arbitrary",)),
    )(x.reshape(N, D), p_pack, w_slab)
    return y.reshape(B, T, D)


# ----------------------------------------------------------------------------
# One-time parameter preparation (hoisted out of the forward path).
# ----------------------------------------------------------------------------
def prepare_params(params, *, batch, seq, n_head=N_HEAD):
    (ln1_w, ln1_b, w_qkv, b_qkv, w_ao, b_ao,
     ln2_w, ln2_b, w_fc, b_fc, w_mp, b_mp) = params
    D = ln1_w.shape[-1]
    hd = D // n_head
    N = batch * seq
    M = n_head * N
    L = 128
    assert 4 * D <= L and M <= L, "packing assumes 4*d <= 128 and n_head*B*T <= 128"
    f32 = jnp.float32
    scale = 1.0 / math.sqrt(hd)

    # Head-interleave qkv columns; fold the softmax scale into the q columns.
    wq, wk, wv = w_qkv[:, 0:D] * scale, w_qkv[:, D:2 * D], w_qkv[:, 2 * D:3 * D]
    w_qkv_i = jnp.concatenate(
        [jnp.concatenate([wq[:, h * hd:(h + 1) * hd],
                          wk[:, h * hd:(h + 1) * hd],
                          wv[:, h * hd:(h + 1) * hd]], axis=1)
         for h in range(n_head)], axis=1)                            # (D, 3D)
    bq, bk, bv = b_qkv[0, 0:D] * scale, b_qkv[0, D:2 * D], b_qkv[0, 2 * D:3 * D]
    b_qkv_i = jnp.concatenate(
        [jnp.concatenate([bq[h * hd:(h + 1) * hd],
                          bk[h * hd:(h + 1) * hd],
                          bv[h * hd:(h + 1) * hd]])
         for h in range(n_head)])                                    # (3D,)

    def row(v):
        v = jnp.asarray(v, f32).reshape(1, -1)
        return jnp.pad(v, ((0, 0), (0, L - v.shape[1])))

    p_pack = jnp.concatenate(
        [row(ln1_w), row(ln1_b), row(ln2_w), row(ln2_b),
         row(b_qkv_i), row(b_ao), row(b_fc), row(b_mp)], axis=0)     # (8, 128)

    # Additive (head, batch, causal) block-diagonal mask over head-packed rows.
    m = jnp.arange(M)
    head_id, tok = m // N, m % N
    bat, t = tok // seq, tok % seq
    ok = ((head_id[:, None] == head_id[None, :])
          & (bat[:, None] == bat[None, :])
          & (t[:, None] >= t[None, :]))
    mask_add = jnp.where(ok, 0.0, NEG_INF).astype(f32)               # (M, M)

    def blk(w, rows):
        out = jnp.zeros((rows, L), f32)
        return out.at[:w.shape[0], :w.shape[1]].set(jnp.asarray(w, f32))

    w_slab = jnp.concatenate(
        [blk(w_qkv_i, D),        # rows [0, D)     : c_attn W (interleaved)
         blk(w_fc, D),           # rows [D, 2D)    : mlp c_fc W
         blk(w_mp, 4 * D),       # rows [2D, 6D)   : mlp c_proj W
         blk(w_ao, D),           # rows [6D, 7D)   : attn c_proj W
         blk(mask_add, M)],      # rows [7D, 7D+M) : additive attention mask
        axis=0).astype(jnp.bfloat16)                                 # (7D+M, 128)
    return p_pack, w_slab


def init_params(key, D):
    std = 0.02
    ks = jax.random.split(key, 8)
    f32 = jnp.float32
    ln1_w = jnp.ones((1, D), f32)
    ln1_b = jnp.zeros((1, D), f32)
    ln2_w = jnp.ones((1, D), f32)
    ln2_b = jnp.zeros((1, D), f32)
    w_qkv = std * jax.random.normal(ks[0], (D, 3 * D), f32)
    b_qkv = std * jax.random.normal(ks[1], (1, 3 * D), f32)
    w_ao = std * jax.random.normal(ks[2], (D, D), f32)
    b_ao = std * jax.random.normal(ks[3], (1, D), f32)
    w_fc = std * jax.random.normal(ks[4], (D, 4 * D), f32)
    b_fc = std * jax.random.normal(ks[5], (1, 4 * D), f32)
    w_mp = std * jax.random.normal(ks[6], (4 * D, D), f32)
    b_mp = std * jax.random.normal(ks[7], (1, D), f32)
    return (ln1_w, ln1_b, w_qkv, b_qkv, w_ao, b_ao,
            ln2_w, ln2_b, w_fc, b_fc, w_mp, b_mp)


def block_reference(x, params):
    (ln1_w, ln1_b, w_qkv, b_qkv, w_ao, b_ao,
     ln2_w, ln2_b, w_fc, b_fc, w_mp, b_mp) = params
    B, T, D = x.shape
    hd = D // N_HEAD
    f32 = jnp.float32
    # Mirror the kernel's bf16 weight storage so the check isolates structural bugs.
    rnd = lambda w: w.astype(jnp.bfloat16).astype(f32)

    def ln(z, w, b):
        mu = z.mean(-1, keepdims=True)
        var = ((z - mu) ** 2).mean(-1, keepdims=True)
        return (z - mu) / jnp.sqrt(var + LN_EPS) * w[0] + b[0]

    h = ln(x, ln1_w, ln1_b)
    qkv = h @ rnd(w_qkv) + b_qkv[0]
    q, k, v = jnp.split(qkv, 3, axis=-1)
    q = q.reshape(B, T, N_HEAD, hd).transpose(0, 2, 1, 3)
    k = k.reshape(B, T, N_HEAD, hd).transpose(0, 2, 1, 3)
    v = v.reshape(B, T, N_HEAD, hd).transpose(0, 2, 1, 3)
    s = jnp.einsum('bhqd,bhkd->bhqk', q, k) / math.sqrt(hd)
    mask = jnp.tril(jnp.ones((T, T), bool))
    s = jnp.where(mask, s, -jnp.inf)
    p = jax.nn.softmax(s, axis=-1)
    o = jnp.einsum('bhqk,bhkd->bhqd', p, v).transpose(0, 2, 1, 3).reshape(B, T, D)
    x = x + o @ rnd(w_ao) + b_ao[0]
    h2 = ln(x, ln2_w, ln2_b)
    ff = _gelu_tanh(h2 @ rnd(w_fc) + b_fc[0])
    return x + ff @ rnd(w_mp) + b_mp[0]


if __name__ == "__main__":
    B, T, D = 2, 8, 32
    key = jax.random.PRNGKey(0)
    kx, kp = jax.random.split(key)
    x = jax.random.normal(kx, (B, T, D), jnp.float32)
    params = init_params(kp, D)

    # One-time packing (hoisted out of the forward path per the perf review).
    p_pack, w_slab = prepare_params(params, batch=B, seq=T, n_head=N_HEAD)
    p_pack = jax.block_until_ready(p_pack)
    w_slab = jax.block_until_ready(w_slab)

    out = jax.block_until_ready(block_forward(x, p_pack, w_slab))
    ref = jax.block_until_ready(block_reference(x, params))

    assert out.shape == (B, T, D) and out.dtype == jnp.float32
    err = float(jnp.max(jnp.abs(out - ref)))
    # bf16 matmul operands/weights with f32 accumulation + approx reciprocal:
    # tolerance loosened vs pure f32, still far below any structural error.
    assert jnp.allclose(out, ref, atol=3e-3, rtol=3e-3), f"max abs err {err}"
    print("KERNEL_OK")
</pallas_src>

<mosaic_0001>
module attributes {stable_mosaic.version = 11 : i64} {
  func.func @block_kernel(%arg0: i32, %arg1: memref<16x32xf32, #tpu.memory_space<vmem>>, %arg2: memref<8x128xf32, #tpu.memory_space<vmem>>, %arg3: memref<288x128xbf16, #tpu.memory_space<vmem>>, %arg4: memref<16x32xf32, #tpu.memory_space<vmem>>) attributes {dimension_semantics = [#tpu.dimension_semantics<arbitrary>], iteration_bounds = array<i64: 1>, scalar_prefetch = 0 : i64, scratch_operands = 0 : i64, tpu.core_type = #tpu.core_type<tc>, window_params = [{pipeline_mode = #tpu.pipeline_mode<synchronous>, transform_indices = @transform_0, window_bounds = array<i64: 16, 32>}, {pipeline_mode = #tpu.pipeline_mode<synchronous>, transform_indices = @transform_1, window_bounds = array<i64: 8, 128>}, {pipeline_mode = #tpu.pipeline_mode<synchronous>, transform_indices = @transform_2, window_bounds = array<i64: 288, 128>}, {pipeline_mode = #tpu.pipeline_mode<synchronous>, transform_indices = @transform_3, window_bounds = array<i64: 16, 32>}]} {
    %c0 = arith.constant 0 : index
    %c0_0 = arith.constant 0 : index
    %0 = vector.load %arg1[%c0, %c0_0] : memref<16x32xf32, #tpu.memory_space<vmem>>, vector<16x32xf32>
    %c0_1 = arith.constant 0 : index
    %c0_2 = arith.constant 0 : index
    %1 = vector.load %arg2[%c0_1, %c0_2] : memref<8x128xf32, #tpu.memory_space<vmem>>, vector<1x32xf32>
    %c1 = arith.constant 1 : index
    %c0_3 = arith.constant 0 : index
    %2 = vector.load %arg2[%c1, %c0_3] : memref<8x128xf32, #tpu.memory_space<vmem>>, vector<1x32xf32>
    %c2 = arith.constant 2 : index
    %c0_4 = arith.constant 0 : index
    %3 = vector.load %arg2[%c2, %c0_4] : memref<8x128xf32, #tpu.memory_space<vmem>>, vector<1x32xf32>
    %c3 = arith.constant 3 : index
    %c0_5 = arith.constant 0 : index
    %4 = vector.load %arg2[%c3, %c0_5] : memref<8x128xf32, #tpu.memory_space<vmem>>, vector<1x32xf32>
    %c4 = arith.constant 4 : index
    %c0_6 = arith.constant 0 : index
    %5 = vector.load %arg2[%c4, %c0_6] : memref<8x128xf32, #tpu.memory_space<vmem>>, vector<1x128xf32>
    %c5 = arith.constant 5 : index
    %c0_7 = arith.constant 0 : index
    %6 = vector.load %arg2[%c5, %c0_7] : memref<8x128xf32, #tpu.memory_space<vmem>>, vector<1x128xf32>
    %c6 = arith.constant 6 : index
    %c0_8 = arith.constant 0 : index
    %7 = vector.load %arg2[%c6, %c0_8] : memref<8x128xf32, #tpu.memory_space<vmem>>, vector<1x128xf32>
    %c7 = arith.constant 7 : index
    %c0_9 = arith.constant 0 : index
    %8 = vector.load %arg2[%c7, %c0_9] : memref<8x128xf32, #tpu.memory_space<vmem>>, vector<1x128xf32>
    %cst = arith.constant dense<0.000000e+00> : vector<16xf32>
    %9 = vector.multi_reduction <add>, %0, %cst [1] : vector<16x32xf32> to vector<16xf32>
    %10 = vector.shape_cast %9 : vector<16xf32> to vector<16x1xf32>
    %cst_10 = arith.constant 3.200000e+01 : f32
    %11 = vector.broadcast %cst_10 : f32 to vector<16x1xf32>
    %12 = arith.divf %10, %11 : vector<16x1xf32>
    %13 = vector.broadcast %12 : vector<16x1xf32> to vector<16x32xf32>
    %14 = arith.subf %0, %13 : vector<16x32xf32>
    %15 = arith.mulf %14, %14 : vector<16x32xf32>
    %cst_11 = arith.constant dense<0.000000e+00> : vector<16xf32>
    %16 = vector.multi_reduction <add>, %15, %cst_11 [1] : vector<16x32xf32> to vector<16xf32>
    %17 = vector.shape_cast %16 : vector<16xf32> to vector<16x1xf32>
    %cst_12 = arith.constant 3.200000e+01 : f32
    %18 = vector.broadcast %cst_12 : f32 to vector<16x1xf32>
    %19 = arith.divf %17, %18 : vector<16x1xf32>
    %20 = vector.broadcast %12 : vector<16x1xf32> to vector<16x32xf32>
    %21 = arith.subf %0, %20 : vector<16x32xf32>
    %cst_13 = arith.constant 9.99999974E-6 : f32
    %22 = vector.broadcast %cst_13 : f32 to vector<16x1xf32>
    %23 = arith.addf %19, %22 : vector<16x1xf32>
    %24 = math.rsqrt %23 : vector<16x1xf32>
    %25 = vector.broadcast %24 : vector<16x1xf32> to vector<16x32xf32>
    %26 = arith.mulf %21, %25 : vector<16x32xf32>
    %27 = vector.broadcast %1 : vector<1x32xf32> to vector<16x32xf32>
    %28 = arith.mulf %26, %27 : vector<16x32xf32>
    %29 = vector.broadcast %2 : vector<1x32xf32> to vector<16x32xf32>
    %30 = arith.addf %28, %29 : vector<16x32xf32>
    %31 = arith.truncf %30 : vector<16x32xf32> to vector<16x32xbf16>
    %c0_14 = arith.constant 0 : index
    %c0_15 = arith.constant 0 : index
    %32 = vector.load %arg3[%c0_14, %c0_15] : memref<288x128xbf16, #tpu.memory_space<vmem>>, vector<32x128xbf16>
    %cst_16 = arith.constant dense<0.000000e+00> : vector<16x128xf32>
    %33 = tpu.matmul %31, %32, %cst_16 {dimension_numbers = #tpu.dot_dimension_numbers<[1], [0], [0], [1], [0, 0, 1, 1], [], []>} : vector<16x32xbf16>, vector<32x128xbf16>, vector<16x128xf32> -> vector<16x128xf32>
    %34 = vector.broadcast %5 : vector<1x128xf32> to vector<16x128xf32>
    %35 = arith.addf %33, %34 : vector<16x128xf32>
    %36 = vector.extract_strided_slice %35 {offsets = [0, 0], sizes = [16, 24], strides = [1, 1]} : vector<16x128xf32> to vector<16x24xf32>
    %37 = vector.extract_strided_slice %35 {offsets = [0, 24], sizes = [16, 24], strides = [1, 1]} : vector<16x128xf32> to vector<16x24xf32>
    %38 = vector.extract_strided_slice %35 {offsets = [0, 48], sizes = [16, 24], strides = [1, 1]} : vector<16x128xf32> to vector<16x24xf32>
    %39 = vector.extract_strided_slice %35 {offsets = [0, 72], sizes = [16, 24], strides = [1, 1]} : vector<16x128xf32> to vector<16x24xf32>
    %40 = tpu.concatenate %36, %37, %38, %39 in 0 : vector<16x24xf32>, vector<16x24xf32>, vector<16x24xf32>, vector<16x24xf32> -> vector<64x24xf32>
    %41 = vector.extract_strided_slice %40 {offsets = [0, 0], sizes = [64, 8], strides = [1, 1]} : vector<64x24xf32> to vector<64x8xf32>
    %42 = vector.extract_strided_slice %40 {offsets = [0, 8], sizes = [64, 8], strides = [1, 1]} : vector<64x24xf32> to vector<64x8xf32>
    %43 = vector.extract_strided_slice %40 {offsets = [0, 16], sizes = [64, 8], strides = [1, 1]} : vector<64x24xf32> to vector<64x8xf32>
    %44 = arith.truncf %43 : vector<64x8xf32> to vector<64x8xbf16>
    %45 = tpu.transpose %42, [1, 0] : vector<64x8xf32> -> vector<8x64xf32>
    %cst_17 = arith.constant dense<0.000000e+00> : vector<64x64xf32>
    %46 = tpu.matmul %41, %45, %cst_17 {dimension_numbers = #tpu.dot_dimension_numbers<[1], [0], [0], [1], [0, 0, 1, 1], [], []>} : vector<64x8xf32>, vector<8x64xf32>, vector<64x64xf32> -> vector<64x64xf32>
    %c224 = arith.constant 224 : index
    %c0_18 = arith.constant 0 : index
    %47 = vector.load %arg3[%c224, %c0_18] : memref<288x128xbf16, #tpu.memory_space<vmem>>, vector<64x64xbf16>
    %48 = arith.extf %47 : vector<64x64xbf16> to vector<64x64xf32>
    %49 = arith.addf %46, %48 : vector<64x64xf32>
    %cst_19 = arith.constant dense<0xFF800000> : vector<64xf32>
    %50 = vector.multi_reduction <maximumf>, %49, %cst_19 [1] : vector<64x64xf32> to vector<64xf32>
    %51 = vector.shape_cast %50 : vector<64xf32> to vector<64x1xf32>
    %52 = vector.broadcast %51 : vector<64x1xf32> to vector<64x64xf32>
    %53 = arith.subf %49, %52 : vector<64x64xf32>
    %54 = math.exp %53 : vector<64x64xf32>
    %cst_20 = arith.constant dense<0.000000e+00> : vector<64xf32>
    %55 = vector.multi_reduction <add>, %54, %cst_20 [1] : vector<64x64xf32> to vector<64xf32>
    %56 = vector.shape_cast %55 : vector<64xf32> to vector<64x1xf32>
    %57 = tpu.reciprocal %56 {approx = true} : vector<64x1xf32> -> vector<64x1xf32>
    %58 = vector.broadcast %57 : vector<64x1xf32> to vector<64x64xf32>
    %59 = arith.mulf %54, %58 : vector<64x64xf32>
    %60 = arith.truncf %59 : vector<64x64xf32> to vector<64x64xbf16>
    %cst_21 = arith.constant dense<0.000000e+00> : vector<64x8xf32>
    %61 = tpu.matmul %60, %44, %cst_21 {dimension_numbers = #tpu.dot_dimension_numbers<[1], [0], [0], [1], [0, 0, 1, 1], [], []>} : vector<64x64xbf16>, vector<64x8xbf16>, vector<64x8xf32> -> vector<64x8xf32>
    %62 = vector.extract_strided_slice %61 {offsets = [0, 0], sizes = [16, 8], strides = [1, 1]} : vector<64x8xf32> to vector<16x8xf32>
    %63 = vector.extract_strided_slice %61 {offsets = [16, 0], sizes = [16, 8], strides = [1, 1]} : vector<64x8xf32> to vector<16x8xf32>
    %64 = vector.extract_strided_slice %61 {offsets = [32, 0], sizes = [16, 8], strides = [1, 1]} : vector<64x8xf32> to vector<16x8xf32>
    %65 = vector.extract_strided_slice %61 {offsets = [48, 0], sizes = [16, 8], strides = [1, 1]} : vector<64x8xf32> to vector<16x8xf32>
    %66 = tpu.concatenate %62, %63, %64, %65 in 1 : vector<16x8xf32>, vector<16x8xf32>, vector<16x8xf32>, vector<16x8xf32> -> vector<16x32xf32>
    %67 = arith.truncf %66 : vector<16x32xf32> to vector<16x32xbf16>
    %c192 = arith.constant 192 : index
    %c0_22 = arith.constant 0 : index
    %68 = vector.load %arg3[%c192, %c0_22] : memref<288x128xbf16, #tpu.memory_space<vmem>>, vector<32x128xbf16>
    %cst_23 = arith.constant dense<0.000000e+00> : vector<16x128xf32>
    %69 = tpu.matmul %67, %68, %cst_23 {dimension_numbers = #tpu.dot_dimension_numbers<[1], [0], [0], [1], [0, 0, 1, 1], [], []>} : vector<16x32xbf16>, vector<32x128xbf16>, vector<16x128xf32> -> vector<16x128xf32>
    %70 = vector.broadcast %6 : vector<1x128xf32> to vector<16x128xf32>
    %71 = arith.addf %69, %70 : vector<16x128xf32>
    %72 = vector.extract_strided_slice %71 {offsets = [0, 0], sizes = [16, 32], strides = [1, 1]} : vector<16x128xf32> to vector<16x32xf32>
    %73 = arith.addf %0, %72 : vector<16x32xf32>
    %cst_24 = arith.constant dense<0.000000e+00> : vector<16xf32>
    %74 = vector.multi_reduction <add>, %73, %cst_24 [1] : vector<16x32xf32> to vector<16xf32>
    %75 = vector.shape_cast %74 : vector<16xf32> to vector<16x1xf32>
    %cst_25 = arith.constant 3.200000e+01 : f32
    %76 = vector.broadcast %cst_25 : f32 to vector<16x1xf32>
    %77 = arith.divf %75, %76 : vector<16x1xf32>
    %78 = vector.broadcast %77 : vector<16x1xf32> to vector<16x32xf32>
    %79 = arith.subf %73, %78 : vector<16x32xf32>
    %80 = arith.mulf %79, %79 : vector<16x32xf32>
    %cst_26 = arith.constant dense<0.000000e+00> : vector<16xf32>
    %81 = vector.multi_reduction <add>, %80, %cst_26 [1] : vector<16x32xf32> to vector<16xf32>
    %82 = vector.shape_cast %81 : vector<16xf32> to vector<16x1xf32>
    %cst_27 = arith.constant 3.200000e+01 : f32
    %83 = vector.broadcast %cst_27 : f32 to vector<16x1xf32>
    %84 = arith.divf %82, %83 : vector<16x1xf32>
    %85 = vector.broadcast %77 : vector<16x1xf32> to vector<16x32xf32>
    %86 = arith.subf %73, %85 : vector<16x32xf32>
    %cst_28 = arith.constant 9.99999974E-6 : f32
    %87 = vector.broadcast %cst_28 : f32 to vector<16x1xf32>
    %88 = arith.addf %84, %87 : vector<16x1xf32>
    %89 = math.rsqrt %88 : vector<16x1xf32>
    %90 = vector.broadcast %89 : vector<16x1xf32> to vector<16x32xf32>
    %91 = arith.mulf %86, %90 : vector<16x32xf32>
    %92 = vector.broadcast %3 : vector<1x32xf32> to vector<16x32xf32>
    %93 = arith.mulf %91, %92 : vector<16x32xf32>
    %94 = vector.broadcast %4 : vector<1x32xf32> to vector<16x32xf32>
    %95 = arith.addf %93, %94 : vector<16x32xf32>
    %96 = arith.truncf %95 : vector<16x32xf32> to vector<16x32xbf16>
    %c32 = arith.constant 32 : index
    %c0_29 = arith.constant 0 : index
    %97 = vector.load %arg3[%c32, %c0_29] : memref<288x128xbf16, #tpu.memory_space<vmem>>, vector<32x128xbf16>
    %cst_30 = arith.constant dense<0.000000e+00> : vector<16x128xf32>
    %98 = tpu.matmul %96, %97, %cst_30 {dimension_numbers = #tpu.dot_dimension_numbers<[1], [0], [0], [1], [0, 0, 1, 1], [], []>} : vector<16x32xbf16>, vector<32x128xbf16>, vector<16x128xf32> -> vector<16x128xf32>
    %99 = vector.broadcast %7 : vector<1x128xf32> to vector<16x128xf32>
    %100 = arith.addf %98, %99 : vector<16x128xf32>
    %cst_31 = arith.constant 5.000000e-01 : f32
    %101 = vector.broadcast %cst_31 : f32 to vector<16x128xf32>
    %102 = arith.mulf %101, %100 : vector<16x128xf32>
    %cst_32 = arith.constant 4.471500e-02 : f32
    %103 = vector.broadcast %cst_32 : f32 to vector<16x128xf32>
    %104 = arith.mulf %103, %100 : vector<16x128xf32>
    %105 = arith.mulf %104, %100 : vector<16x128xf32>
    %106 = arith.mulf %105, %100 : vector<16x128xf32>
    %107 = arith.addf %100, %106 : vector<16x128xf32>
    %cst_33 = arith.constant 0.797884583 : f32
    %108 = vector.broadcast %cst_33 : f32 to vector<16x128xf32>
    %109 = arith.mulf %108, %107 : vector<16x128xf32>
    %110 = math.tanh %109 : vector<16x128xf32>
    %cst_34 = arith.constant 1.000000e+00 : f32
    %111 = vector.broadcast %cst_34 : f32 to vector<16x128xf32>
    %112 = arith.addf %111, %110 : vector<16x128xf32>
    %113 = arith.mulf %102, %112 : vector<16x128xf32>
    %114 = arith.truncf %113 : vector<16x128xf32> to vector<16x128xbf16>
    %c64 = arith.constant 64 : index
    %c0_35 = arith.constant 0 : index
    %115 = vector.load %arg3[%c64, %c0_35] : memref<288x128xbf16, #tpu.memory_space<vmem>>, vector<128x128xbf16>
    %cst_36 = arith.constant dense<0.000000e+00> : vector<16x128xf32>
    %116 = tpu.matmul %114, %115, %cst_36 {dimension_numbers = #tpu.dot_dimension_numbers<[1], [0], [0], [1], [0, 0, 1, 1], [], []>} : vector<16x128xbf16>, vector<128x128xbf16>, vector<16x128xf32> -> vector<16x128xf32>
    %117 = vector.broadcast %8 : vector<1x128xf32> to vector<16x128xf32>
    %118 = arith.addf %116, %117 : vector<16x128xf32>
    %119 = vector.extract_strided_slice %118 {offsets = [0, 0], sizes = [16, 32], strides = [1, 1]} : vector<16x128xf32> to vector<16x32xf32>
    %120 = arith.addf %73, %119 : vector<16x32xf32>
    %c0_37 = arith.constant 0 : index
    %c0_38 = arith.constant 0 : index
    %121 = vector.load %arg4[%c0_37, %c0_38] : memref<16x32xf32, #tpu.memory_space<vmem>>, vector<16x32xf32>
    tpu.vector_store %arg4[%c0_37, %c0_38], %120 {strides = array<i32>} : memref<16x32xf32, #tpu.memory_space<vmem>>, vector<16x32xf32>,
    return
  }
  func.func @transform_0(%arg0: i32) -> (i32, i32) {
    %c0_i32 = arith.constant 0 : i32
    %c0_i32_0 = arith.constant 0 : i32
    %c0_i32_1 = arith.constant 0 : i32
    return %c0_i32, %c0_i32_0 : i32, i32
  }
  func.func @transform_1(%arg0: i32) -> (i32, i32) {
    %c0_i32 = arith.constant 0 : i32
    %c0_i32_0 = arith.constant 0 : i32
    %c0_i32_1 = arith.constant 0 : i32
    return %c0_i32, %c0_i32_0 : i32, i32
  }
  func.func @transform_2(%arg0: i32) -> (i32, i32) {
    %c0_i32 = arith.constant 0 : i32
    %c0_i32_0 = arith.constant 0 : i32
    %c0_i32_1 = arith.constant 0 : i32
    return %c0_i32, %c0_i32_0 : i32, i32
  }
  func.func @transform_3(%arg0: i32) -> (i32, i32) {
    %c0_i32 = arith.constant 0 : i32
    %c0_i32_0 = arith.constant 0 : i32
    %c0_i32_1 = arith.constant 0 : i32
    return %c0_i32, %c0_i32_0 : i32, i32
  }
}

</mosaic_0001>

<bundles_post_ra>
// kernel: block_forward.1
= control target key start
LH: loop header
LB: loop body
LE: loop exit
PB: predicated region body
PF: predicated region fallthrough
CT: control target
= control target key end

     0   :  { %8 = vsyncpa [#allocation3], 0  ;;  %s1589_s0 = inlined_call_operand.hbm [shape: f32[16,32], index: 0, kind: input, shape index: {}]   ;;  %s1590_s1 = inlined_call_operand.hbm [shape: f32[8,128], index: 1, kind: input, shape index: {}]   ;;  %s1591_s2 = inlined_call_operand.hbm [shape: bf16[288,128], index: 2, kind: input, shape index: {}]   ;;  %s1592_s3 = inlined_call_operand.hbm [shape: f32[16,32], index: 3, kind: output, shape index: {}]  }
   0x1   :  { %9 = vsyncpa [#allocation6], 0 }
   0x2   :  { %10 = vsyncpa [#allocation4], 0  ;;  %s1325_s12 = smov [#allocation5]   ;;  %s1326_s14 = smov [#allocation2]  }
   0x3   :  { %s29_s13 = sshll.u32 %s1325_s12, 4  ;;  %s16_s15 = sshll.u32 %s1326_s14, 4  ;;  %s30_s13 = int_to_ptr.vmem [resolvable:$true] %s29_s13  ;;  %s1362_s15 = int_to_ptr.vmem [resolvable:$true] %s16_s15 }
   0x4   :  { %s1231_s18 = scalar_lea.hbm %s1590_s1, 128 }
   0x5   :  { %p1232_p0 = scmp.ne.s32.totalorder %s1590_s1, %s1231_s18  ;;  %p1235_p1 = scmp.lt.u32.totalorder %s1231_s18, %s1590_s1 }
   0x7   :  { %p1237_p2 = pnand %p1235_p1, %p1232_p0 }
   0x9   :  { %1240 = shalt.err (!%p1237_p2)
}
   0xa   :  { %s1241_s23 = scalar_lea.vmem %s30_s13, 128  ;;  %p1246_p4 = scmp.lt.s32.totalorder %s30_s13, %s30_s13 }
   0xb   :  { %p1242_p3 = scmp.ne.s32.totalorder %s30_s13, %s1241_s23  ;;  %p1247_p5 = scmp.lt.s32.totalorder %s1241_s23, %s1241_s23 }
   0xd   :  { %p1248_p6 = por %p1247_p5, %p1246_p4 }
   0xf   :  { %p1249_p7 = pnand %p1248_p6, %p1242_p3 }
  0x11   :  { %1252 = shalt.err (!%p1249_p7)
}
  0x12   :  { %32 = dma.hbm_to_vmem [thread:$0]  %s1590_s1, 128, %s30_s13, [#allocation6]  }
  0x13   :  { %s1253_s28 = scalar_lea.hbm %s1589_s0, 256 }
  0x14   :  { %p1254_p8 = scmp.ne.s32.totalorder %s1589_s0, %s1253_s28  ;;  %p1257_p9 = scmp.lt.u32.totalorder %s1253_s28, %s1589_s0 }
  0x16   :  { %p1259_p10 = pnand %p1257_p9, %p1254_p8 }
  0x18   :  { %1262 = shalt.err (!%p1259_p10)
}
  0x19   :  { %s1263_s6 = scalar_lea.vmem %s1362_s15, 256  ;;  %p1268_p12 = scmp.lt.s32.totalorder %s1362_s15, %s1362_s15 }
  0x1a   :  { %p1264_p11 = scmp.ne.s32.totalorder %s1362_s15, %s1263_s6  ;;  %p1269_p13 = scmp.lt.s32.totalorder %s1263_s6, %s1263_s6 }
  0x1c   :  { %p1270_p0 = por %p1269_p13, %p1268_p12 }
  0x1e   :  { %p1271_p1 = pnand %p1270_p0, %p1264_p11 }
  0x20   :  { %1274 = shalt.err (!%p1271_p1)
}
  0x21   :  { %s1327_s1 = smov 128   ;;  %s1328_s7 = smov 8  }
  0x22   :  { %22 = dma.hbm_to_vmem [thread:$0]  %s1589_s0, 256, %s1362_s15, [#allocation3], %s1327_s1, %s1327_s1, %s1328_s7  }
  0x23   :  { %s1329_s10 = smov [#allocation7]   ;;  %s1275_s14 = scalar_lea.hbm %s1591_s2, 2304 }
  0x24   :  { %s38_s11 = sshll.u32 %s1329_s10, 4  ;;  %p1276_p2 = scmp.ne.s32.totalorder %s1591_s2, %s1275_s14  ;;  %s39_s11 = int_to_ptr.vmem [resolvable:$true] %s38_s11 }
  0x25   :  { %p1279_p3 = scmp.lt.u32.totalorder %s1275_s14, %s1591_s2 }
  0x27   :  { %p1281_p4 = pnand %p1279_p3, %p1276_p2 }
  0x29   :  { %1284 = shalt.err (!%p1281_p4)
}
  0x2a   :  { %s1285_s20 = scalar_lea.vmem %s39_s11, 2304  ;;  %p1290_p6 = scmp.lt.s32.totalorder %s39_s11, %s39_s11 }
  0x2b   :  { %p1286_p5 = scmp.ne.s32.totalorder %s39_s11, %s1285_s20  ;;  %p1291_p7 = scmp.lt.s32.totalorder %s1285_s20, %s1285_s20 }
  0x2d   :  { %p1292_p8 = por %p1291_p7, %p1290_p6 }
  0x2f   :  { %p1293_p9 = pnand %p1292_p8, %p1286_p5 }
  0x31   :  { %1296 = shalt.err (!%p1293_p9)
}
  0x32   :  { %s1330_s0 = smov 64   ;;  %s1331_s15 = smov 4  }
  0x33   :  { %44 = dma.hbm_to_vmem [thread:$0]  %s1591_s2, 2304, %s39_s11, [#allocation6], %s1330_s0, %s1330_s0, %s1331_s15  }
  0x34   :  { %1319 = dma.done.wait [#allocation3], 256  }
  0x35   :  { %1320 = vsyncadd [#allocation3], 4294967040 }
  0x36   :  { %1321 = dma.done.wait [#allocation6], 2432  }
  0x37   :  { %1322 = vsyncadd [#allocation6], 4294964864  ;;  %vm65_vm0 = vcmask 261120   ;;  %v1408_v0 = vld [vmem:[#allocation2] sm:$0xff]  ;;  %v1410_v1 = vld [vmem:[#allocation2 + $0x8] sm:$0xff]  ;;  %v1332_v15 = vmov 0.0  }
  0x38   :  { %v66_v2 = vsel %vm65_vm0, %v1408_v0, 0.0  ;;  %v69_v3 = vsel %vm65_vm0, %v1410_v1, 0.0  ;;  %v1173_v14 = vld [vmem:[#allocation7] sm:$0xff]   ;;  %1009 = vmatprep.subr.bf16.mxu0 %v1332_v15  ;;  %v1174_v16 = vld [vmem:[#allocation7 + $0x8] sm:$0xff]   ;;  %vm1333_vm1 = vmmov 0   ;;  %vm226_vm2 = vcmask 64512  }
  0x39   :  { %67 = vadd.xlane.f32.xlu0 %v66_v2  ;;  %1010 = vmatpush3.bf16.msra.mxu0 %v1173_v14  ;;  %v902_v25 = vld [vmem:[#allocation5] ss:$0 sm:$0xff]  ;;  %v903_v29 = vld [vmem:[#allocation5 + $0x1] ss:$0 sm:$0xff]  ;;  %v904_v34 = vld [vmem:[#allocation5 + $0x4] ss:$0 sm:$0xff] }
  0x3a   :  { %1013 = vmatprep.mubr.msk.bf16.mxu0 %vm1333_vm1, %v1332_v15  ;;  %1011 = vmatprep.subr.bf16.mxu0 %v1332_v15  ;;  %s1334_s2 = smov 104   ;;  %s1335_s23 = smov 56   ;;  %vm1453_vm3 = vmpackc.low %vm226_vm2, %vm226_vm2  ;;  %vm364_vm4 = vcmask 523264   ;;  %vm576_vm5 = vcmask 130048   ;;  %vm579_vm6 = vcmask 195584  }
  0x3b   :  { %s1336_s24 = smov 80   ;;  %s1337_s25 = smov 120  }
  0x3c   :  { %s1338_s26 = smov 112   ;;  %s1339_s27 = smov 24  }
  0x3d   :  { %70 = vadd.xlane.f32.xlu0 %v69_v3  ;;  %1012 = vmatpush3.bf16.msra.mxu0 %v1174_v16  ;;  %v965_v16 = vld [vmem:[#allocation7 + $0x80] sm:$0xff]   ;;  %s1340_s28 = smov 16   ;;  %s1341_s29 = smov [#allocation8]  }
  0x3e   :  { %s889_s30 = sshll.u32 %s1341_s29, 4  ;;  %s890_s30 = int_to_ptr.vmem [resolvable:$true] %s889_s30 }
  0x3f   :  { %s1297_s4 = scalar_lea.vmem %s890_s30, 256  ;;  %p1302_p11 = scmp.lt.s32.totalorder %s890_s30, %s890_s30 }
  0x40   :  { %p1298_p10 = scmp.ne.s32.totalorder %s890_s30, %s1297_s4  ;;  %p1303_p12 = scmp.lt.s32.totalorder %s1297_s4, %s1297_s4 }
  0x42   :  { %p1304_p13 = por %p1303_p12, %p1302_p11 }
  0x44   :  { %p1305_p0 = pnand %p1304_p13, %p1298_p10 }
  0xc6   :  { %v68_v4 = vpop.xlane.xlu0 %67 }
  0xc7   :  { %v73_v5 = vmul.f32 0.03125, %v68_v4 }
  0xc9   :  { %v75_v6 = vsub.f32 %v1408_v0, %v73_v5 }
  0xca   :  { %v71_v7 = vpop.xlane.xlu0 %70 }
  0xcb   :  { %v74_v8 = vmul.f32 0.03125, %v71_v7  ;;  %v77_v9 = vmul.f32 %v75_v6, %v75_v6 }
  0xcd   :  { %v76_v10 = vsub.f32 %v1410_v1, %v74_v8  ;;  %v79_v11 = vsel %vm65_vm0, %v77_v9, 0.0  ;;  %v964_v9 = vld [vmem:[#allocation7 + $0x78] sm:$0xff]  }
  0xce   :  { %80 = vadd.xlane.f32.xlu1 %v79_v11 }
  0xcf   :  { %v78_v12 = vmul.f32 %v76_v10, %v76_v10 }
  0xd1   :  { %v82_v13 = vsel %vm65_vm0, %v78_v12, 0.0 }
  0xd2   :  { %83 = vadd.xlane.f32.xlu1 %v82_v13  ;;  %v954_v13 = vunpack.c.h.bf16 %v964_v9 }
 0x15b   :  { %v81_v17 = vpop.xlane.xlu1 %80 }
 0x15c   :  { %v85_v18 = vmul.f32 0.03125, %v81_v17 }
 0x15e   :  { %v87_v19 = vadd.f32 1e-05, %v85_v18 }
 0x15f   :  { %v84_v20 = vpop.xlane.xlu1 %83 }
 0x160   :  { %1187 = vrsqrt.f32 %v87_v19  ;;  %v86_v21 = vmul.f32 0.03125, %v84_v20  ;;  %v953_v19 = vunpack.c.l.bf16 %v964_v9 }
 0x162   :  { %v88_v22 = vadd.f32 1e-05, %v86_v21 }
 0x164   :  { %1189 = vrsqrt.f32 %v88_v22 }
 0x16a   :  { %v1188_v23 = vpop.eup %1187 }
 0x16b   :  { %v91_v24 = vmul.f32 %v1188_v23, %v75_v6  ;;  %v963_v6 = vld [vmem:[#allocation7 + $0x70] sm:$0xff]   ;;  %v958_v23 = vunpack.c.h.bf16 %v965_v16 }
 0x16c   :  { %v950_v7 = vunpack.c.h.bf16 %v963_v6  ;;  %v949_v8 = vunpack.c.l.bf16 %v963_v6 }
 0x16d   :  { %v97_v28 = vmul.f32 %v902_v25, %v91_v24  ;;  %v966_v24 = vld [vmem:[#allocation7 + $0x88] sm:$0xff]  }
 0x16e   :  { %v1190_v26 = vpop.eup %1189 }
 0x16f   :  { %v92_v27 = vmul.f32 %v1190_v26, %v76_v10  ;;  %v103_v31 = vadd.f32 %v903_v29, %v97_v28  ;;  %v957_v28 = vunpack.c.l.bf16 %v965_v16 }
 0x171   :  { %v98_v30 = vmul.f32 %v902_v25, %v92_v27 }
 0x173   :  { %v104_v32 = vadd.f32 %v903_v29, %v98_v30 }
 0x175   :  { %v105_v33 = vpack.c.bf16 %v104_v32, %v103_v31  ;;  %v962_v31 = vunpack.c.h.bf16 %v966_v24 }
 0x177   :  { %1014 = vmatmul.mubr.msk.bf16.vlgmr.msra.gmra.mrb[0].mxu0 %vm65_vm0, %v105_v33 }
 0x24a   :  { %v163_v35 = vpop.f32.mrb[0].mxu0 }
 0x24b   :  { %v1425_v36 = vadd.f32 %v904_v34, %v163_v35  ;;  %v1015_v37 = vpop.f32.mrb[1].mxu0  ;;  %v961_v35 = vunpack.c.l.bf16 %v966_v24 }
 0x24c   :  { %v166_v38 = vpop.f32.mrb[2].mxu0 }
 0x24d   :  { %v1427_v39 = vadd.f32 %v904_v34, %v166_v38  ;;  %172 = vrot.lane.b32.xlu0 %v1425_v36, %s1334_s2  ;;  %v1016_v40 = vpop.f32.mrb[3].mxu0  ;;  %1033 = vmatprep.mubr.msk.f32.mxu1 %vm226_vm2, %v1425_v36 }
 0x24f   :  { %174 = vrot.lane.b32.xlu1 %v1427_v39, %s1334_s2  ;;  %v1138_v41 = vpack.i.bf16 %v1427_v39, %v1425_v36 }
 0x251   :  { %184 = vrot.lane.b32.xlu0 %v1425_v36, %s1335_s23 }
 0x253   :  { %178 = vrot.lane.b32.xlu1 %v1425_v36, %s1336_s24 }
 0x255   :  { %1139 = vrot.lane.b32.xlu0 %v1138_v41, %s1337_s25 }
 0x257   :  { %180 = vrot.lane.b32.xlu1 %v1427_v39, %s1336_s24 }
 0x25b   :  { %186 = vrot.lane.b32.xlu1 %v1427_v39, %s1335_s23 }
 0x2bf   :  { %v1439_v42 = vpop.permute.xlu0 %172 }
 0x2c1   :  { %v1441_v43 = vpop.permute.xlu1 %174 }
 0x2c2   :  { %v1143_v44 = vpack.i.bf16 %v1441_v43, %v1439_v42 }
 0x2c3   :  { %v1445_v45 = vpop.permute.xlu0 %184 }
 0x2c4   :  { %1144 = vrot.lane.b32.xlu1 %v1143_v44, %s1337_s25 }
 0x2c5   :  { %v1447_v46 = vpop.permute.xlu1 %178 }
 0x2c7   :  { %v1140_v47 = vpop.permute.xlu0 %1139 }
 0x2c8   :  { %v1142_v48 = vunpack.i.h.bf16 %v1140_v47  ;;  %v1141_v49 = vunpack.i.l.bf16 %v1140_v47 }
 0x2c9   :  { %v1449_v50 = vpop.permute.xlu1 %180 }
 0x2ca   :  { %v1148_v52 = vpack.i.bf16 %v1449_v50, %v1447_v46  ;;  %v1097_v53 = vpack.c.bf16 %v1142_v48, %v1141_v49 }
 0x2cc   :  { %1099 = vmatprep.subr.msk.bf16.mxu1 %vm1453_vm3, %v1097_v53  ;;  %1149 = vrot.lane.b32.xlu0 %v1148_v52, %s1337_s25 }
 0x2cd   :  { %1102 = vmatpush3.bf16.xpose.msk.msra.mxu1 %vm1453_vm3, %v1097_v53  ;;  %v1463_v54 = vpop.permute.xlu1 %186 }
 0x2ce   :  { %v1153_v55 = vpack.i.bf16 %v1463_v54, %v1445_v45 }
 0x2d0   :  { %1154 = vrot.lane.b32.xlu1 %v1153_v55, %s1337_s25 }
 0x336   :  { %v1145_v56 = vpop.permute.xlu1 %1144 }
 0x337   :  { %v1147_v57 = vunpack.i.h.bf16 %v1145_v56  ;;  %v1146_v58 = vunpack.i.l.bf16 %v1145_v56 }
 0x339   :  { %v1103_v59 = vpack.c.bf16 %v1147_v57, %v1146_v58 }
 0x33b   :  { %1105 = vmatprep.subr.msk.bf16.mxu1 %vm1453_vm3, %v1103_v59 }
 0x33c   :  { %1108 = vmatpush3.bf16.xpose.msk.msra.mxu1 %vm1453_vm3, %v1103_v59 }
 0x33e   :  { %v1150_v60 = vpop.permute.xlu0 %1149 }
 0x33f   :  { %v1152_v61 = vunpack.i.h.bf16 %v1150_v60  ;;  %v1151_v62 = vunpack.i.l.bf16 %v1150_v60 }
 0x341   :  { %v1109_v63 = vpack.c.bf16 %v1152_v61, %v1151_v62 }
 0x342   :  { %v1155_v2 = vpop.permute.xlu1 %1154 }
 0x343   :  { %v1157_v3 = vunpack.i.h.bf16 %v1155_v2  ;;  %v1156_v4 = vunpack.i.l.bf16 %v1155_v2  ;;  %1111 = vmatprep.subr.msk.bf16.mxu1 %vm1453_vm3, %v1109_v63 }
 0x344   :  { %1114 = vmatpush3.bf16.xpose.msk.msra.mxu1 %vm1453_vm3, %v1109_v63 }
 0x345   :  { %v1115_v5 = vpack.c.bf16 %v1157_v3, %v1156_v4 }
 0x347   :  { %1117 = vmatprep.subr.msk.bf16.mxu1 %vm1453_vm3, %v1115_v5 }
 0x34c   :  { %1120 = vmatpush3.bf16.xpose.msk.msra.mxu1 %vm1453_vm3, %v1115_v5 }
 0x34d   :  { %1077 = vmatprep.subr.bf16.mxu1 %v1332_v15 }
 0x353   :  { %1034 = vmatmul.mubr.msk.f32.vlgmr.msra.gmra.mrb[0].mxu1 %vm226_vm2, %v1427_v39 }
 0x354   :  { %1036 = vmatprep.mubr.msk.f32.mxu1 %vm226_vm2, %v1439_v42 }
 0x357   :  { %1037 = vmatmul.mubr.msk.f32.gmra.mrb[2].mxu1 %vm226_vm2, %v1441_v43 }
 0x358   :  { %1039 = vmatprep.mubr.msk.f32.mxu1 %vm226_vm2, %v1447_v46 }
 0x35b   :  { %1040 = vmatmul.mubr.msk.f32.gmra.mrb[4].mxu1 %vm226_vm2, %v1449_v50 }
 0x35c   :  { %1042 = vmatprep.mubr.msk.f32.mxu1 %vm226_vm2, %v1445_v45 }
 0x35f   :  { %1043 = vmatmul.mubr.msk.f32.gmra.mrb[6].mxu1 %vm226_vm2, %v1463_v54 }
 0x360   :  { %1093 = vmatprep.mubr.msk.bf16.mxu1 %vm1333_vm1, %v1332_v15 }
 0x426   :  { %v1035_v10 = vpop.f32.mrb[0].mxu1 }
 0x427   :  { %v331_v11 = vadd.f32 %v1035_v10, %v950_v7  ;;  %v325_v12 = vpop.f32.mrb[1].mxu1 }
 0x428   :  { %v326_v14 = vadd.f32 %v949_v8, %v325_v12 }
 0x429   :  { %v368_v17 = vsel %vm364_vm4, %v331_v11, -inf }
 0x42a   :  { %369 = vmax.xlane.f32.xlu1 %v368_v17  ;;  %v1038_v18 = vpop.f32.mrb[2].mxu1  ;;  %v365_v20 = vsel %vm364_vm4, %v326_v14, -inf }
 0x42b   :  { %v341_v21 = vadd.f32 %v1038_v18, %v954_v13  ;;  %v335_v22 = vpop.f32.mrb[3].mxu1  ;;  %366 = vmax.xlane.f32.xlu0 %v365_v20 }
 0x42c   :  { %v336_v26 = vadd.f32 %v953_v19, %v335_v22 }
 0x42d   :  { %v374_v25 = vsel %vm364_vm4, %v341_v21, -inf }
 0x42e   :  { %v1041_v27 = vpop.f32.mrb[4].mxu1  ;;  %v371_v37 = vsel %vm364_vm4, %v336_v26, -inf }
 0x42f   :  { %v351_v29 = vadd.f32 %v1041_v27, %v958_v23  ;;  %v345_v30 = vpop.f32.mrb[5].mxu1  ;;  %375 = vmax.xlane.f32.xlu0 %v374_v25 }
 0x430   :  { %v346_v33 = vadd.f32 %v957_v28, %v345_v30  ;;  %v191_v30 = vpack.c.bf16 %v1441_v43, %v1439_v42 }
 0x431   :  { %v380_v32 = vsel %vm364_vm4, %v351_v29, -inf }
 0x432   :  { %381 = vmax.xlane.f32.xlu1 %v380_v32  ;;  %v1044_v34 = vpop.f32.mrb[6].mxu1  ;;  %v377_v47 = vsel %vm364_vm4, %v346_v33, -inf  ;;  %v193_v32 = vpack.c.bf16 %v1463_v54, %v1445_v45 }
 0x433   :  { %v361_v38 = vadd.f32 %v1044_v34, %v962_v31  ;;  %v355_v40 = vpop.f32.mrb[7].mxu1  ;;  %372 = vmax.xlane.f32.xlu0 %v371_v37  ;;  %v192_v31 = vpack.c.bf16 %v1449_v50, %v1447_v46 }
 0x434   :  { %v356_v44 = vadd.f32 %v961_v35, %v355_v40 }
 0x435   :  { %v386_v41 = vsel %vm364_vm4, %v361_v38, -inf }
 0x436   :  { %387 = vmax.xlane.f32.xlu1 %v386_v41  ;;  %v383_v48 = vsel %vm364_vm4, %v356_v44, -inf }
 0x437   :  { %378 = vmax.xlane.f32.xlu0 %v377_v47 }
 0x43b   :  { %384 = vmax.xlane.f32.xlu0 %v383_v48 }
 0x4b7   :  { %v370_v49 = vpop.xlane.xlu1 %369 }
 0x4b8   :  { %v390_v51 = vsub.f32 %v331_v11, %v370_v49  ;;  %v367_v52 = vpop.xlane.xlu0 %366 }
 0x4b9   :  { %v389_v53 = vsub.f32 %v326_v14, %v367_v52 }
 0x4ba   :  { %v399_v55 = vmul.f32 1.442695, %v390_v51 }
 0x4bb   :  { %v397_v56 = vmul.f32 1.442695, %v389_v53 }
 0x4bc   :  { %1191 = vpow2.f32 %v399_v55  ;;  %v376_v57 = vpop.xlane.xlu0 %375 }
 0x4bd   :  { %1193 = vpow2.f32 %v397_v56  ;;  %v392_v58 = vsub.f32 %v341_v21, %v376_v57 }
 0x4bf   :  { %v403_v59 = vmul.f32 1.442695, %v392_v58  ;;  %v382_v60 = vpop.xlane.xlu1 %381 }
 0x4c0   :  { %v394_v61 = vsub.f32 %v351_v29, %v382_v60  ;;  %v373_v62 = vpop.xlane.xlu0 %372 }
 0x4c1   :  { %1195 = vpow2.f32 %v403_v59  ;;  %v391_v63 = vsub.f32 %v336_v26, %v373_v62 }
 0x4c2   :  { %v407_v2 = vmul.f32 1.442695, %v394_v61 }
 0x4c3   :  { %v401_v3 = vmul.f32 1.442695, %v391_v63  ;;  %v388_v4 = vpop.xlane.xlu1 %387 }
 0x4c4   :  { %1197 = vpow2.f32 %v407_v2  ;;  %v396_v5 = vsub.f32 %v361_v38, %v388_v4  ;;  %v379_v6 = vpop.xlane.xlu0 %378  ;;  %v1175_v4 = vld [vmem:[#allocation7 + $0x60] sm:$0xff]  }
 0x4c5   :  { %1199 = vpow2.f32 %v401_v3  ;;  %v393_v7 = vsub.f32 %v346_v33, %v379_v6  ;;  %v190_v33 = vpack.c.bf16 %v1427_v39, %v1425_v36 }
 0x4c6   :  { %v1192_v8 = vpop.eup %1191  ;;  %v411_v9 = vmul.f32 1.442695, %v396_v5  ;;  %v1176_v5 = vld [vmem:[#allocation7 + $0x68] sm:$0xff]  }
 0x4c7   :  { %v1194_v10 = vpop.eup %1193  ;;  %v405_v11 = vmul.f32 1.442695, %v393_v7  ;;  %v416_v12 = vsel %vm364_vm4, %v1192_v8, 0.0 }
 0x4c8   :  { %1201 = vpow2.f32 %v411_v9  ;;  %417 = vadd.xlane.f32.xlu1 %v416_v12  ;;  %v385_v13 = vpop.xlane.xlu0 %384  ;;  %v413_v14 = vsel %vm364_vm4, %v1194_v10, 0.0 }
 0x4c9   :  { %1203 = vpow2.f32 %v405_v11  ;;  %v395_v16 = vsub.f32 %v356_v44, %v385_v13  ;;  %414 = vadd.xlane.f32.xlu0 %v413_v14 }
 0x4cb   :  { %v1506_v17 = vpop.eup %1195  ;;  %v409_v18 = vmul.f32 1.442695, %v395_v16 }
 0x4cc   :  { %v422_v19 = vsel %vm364_vm4, %v1506_v17, 0.0 }
 0x4cd   :  { %1205 = vpow2.f32 %v409_v18  ;;  %423 = vadd.xlane.f32.xlu1 %v422_v19 }
 0x4ce   :  { %v1510_v20 = vpop.eup %1197 }
 0x4cf   :  { %v1200_v21 = vpop.eup %1199  ;;  %v428_v22 = vsel %vm364_vm4, %v1510_v20, 0.0 }
 0x4d0   :  { %v419_v23 = vsel %vm364_vm4, %v1200_v21, 0.0 }
 0x4d1   :  { %429 = vadd.xlane.f32.xlu1 %v428_v22  ;;  %420 = vadd.xlane.f32.xlu0 %v419_v23 }
 0x4d2   :  { %v1515_v24 = vpop.eup %1201 }
 0x4d3   :  { %v1204_v25 = vpop.eup %1203  ;;  %v434_v26 = vsel %vm364_vm4, %v1515_v24, 0.0 }
 0x4d4   :  { %v425_v27 = vsel %vm364_vm4, %v1204_v25, 0.0 }
 0x4d5   :  { %435 = vadd.xlane.f32.xlu1 %v434_v26  ;;  %426 = vadd.xlane.f32.xlu0 %v425_v27 }
 0x4d7   :  { %v1206_v28 = vpop.eup %1205 }
 0x4d8   :  { %v431_v29 = vsel %vm364_vm4, %v1206_v28, 0.0 }
 0x4d9   :  { %432 = vadd.xlane.f32.xlu0 %v431_v29 }
 0x4e6   :  { %463 = vrot.lane.b32.xlu1 %v191_v30, %s1338_s26 }
 0x4ea   :  { %465 = vrot.lane.b32.xlu1 %v192_v31, %s1338_s26 }
 0x4ee   :  { %467 = vrot.lane.b32.xlu1 %v193_v32, %s1338_s26 }
 0x4ef   :  { %461 = vrot.lane.b32.xlu0 %v190_v33, %s1338_s26 }
 0x555   :  { %v418_v34 = vpop.xlane.xlu1 %417 }
 0x556   :  { %1207 = vrcp.f32 %v418_v34  ;;  %v415_v35 = vpop.xlane.xlu0 %414  ;;  %v928_v34 = vld [vmem:[#allocation5 + $0x5] ss:$0 sm:$0xff] }
 0x557   :  { %1209 = vrcp.f32 %v415_v35 }
 0x55a   :  { %v424_v37 = vpop.xlane.xlu1 %423 }
 0x55e   :  { %v430_v42 = vpop.xlane.xlu1 %429  ;;  %v421_v43 = vpop.xlane.xlu0 %420 }
 0x55f   :  { %1211 = vrcp.f32 %v421_v43 }
 0x560   :  { %v1208_v38 = vpop.eup %1207 }
 0x561   :  { %v1210_v40 = vpop.eup %1209  ;;  %v446_v41 = vmul.f32 %v1208_v38, %v1192_v8 }
 0x562   :  { %v436_v46 = vpop.xlane.xlu1 %435  ;;  %v427_v50 = vpop.xlane.xlu0 %426  ;;  %v445_v44 = vmul.f32 %v1210_v40, %v1194_v10 }
 0x563   :  { %1213 = vrcp.f32 %v427_v50 }
 0x564   :  { %v453_v47 = vpack.c.bf16 %v446_v41, %v445_v44  ;;  %1215 = vrcp.f32 %v424_v37 }
 0x565   :  { %1217 = vrcp.f32 %v430_v42 }
 0x566   :  { %1053 = vmatprep.mubr.msk.bf16.mxu0 %vm364_vm4, %v453_v47  ;;  %v433_v45 = vpop.xlane.xlu0 %432  ;;  %v464_v36 = vpop.permute.xlu1 %463 }
 0x567   :  { %1219 = vrcp.f32 %v433_v45 }
 0x568   :  { %1221 = vrcp.f32 %v436_v46 }
 0x569   :  { %v1212_v48 = vpop.eup %1211 }
 0x56a   :  { %v462_v39 = vpop.permute.xlu0 %461  ;;  %v466_v54 = vpop.permute.xlu1 %465  ;;  %v447_v55 = vmul.f32 %v1212_v48, %v1200_v21 }
 0x56b   :  { %1045 = vmatprep.subr.bf16.mxu0 %v462_v39 }
 0x56c   :  { %1046 = vmatpush3.bf16.msra.mxu0 %v462_v39 }
 0x56d   :  { %1047 = vmatprep.subr.bf16.mxu0 %v464_v36  ;;  %v1214_v49 = vpop.eup %1213 }
 0x56e   :  { %v1216_v51 = vpop.eup %1215  ;;  %v468_v52 = vpop.permute.xlu1 %467  ;;  %v449_v56 = vmul.f32 %v1214_v49, %v1204_v25 }
 0x56f   :  { %v1218_v53 = vpop.eup %1217  ;;  %v448_v57 = vmul.f32 %v1216_v51, %v1506_v17 }
 0x570   :  { %1048 = vmatpush3.bf16.msra.mxu0 %v464_v36  ;;  %v450_v58 = vmul.f32 %v1218_v53, %v1510_v20  ;;  %v1178_v53 = vld [vmem:[#allocation7 + $0x18] sm:$0xff]  }
 0x571   :  { %1049 = vmatprep.subr.bf16.mxu0 %v466_v54  ;;  %v454_v59 = vpack.c.bf16 %v448_v57, %v447_v55  ;;  %v1220_v60 = vpop.eup %1219 }
 0x572   :  { %v455_v61 = vpack.c.bf16 %v450_v58, %v449_v56  ;;  %v1222_v62 = vpop.eup %1221  ;;  %v451_v63 = vmul.f32 %v1220_v60, %v1206_v28 }
 0x573   :  { %v452_v2 = vmul.f32 %v1222_v62, %v1515_v24 }
 0x574   :  { %1050 = vmatpush3.bf16.msra.mxu0 %v466_v54 }
 0x575   :  { %1051 = vmatprep.subr.bf16.mxu0 %v468_v52  ;;  %v456_v3 = vpack.c.bf16 %v452_v2, %v451_v63  ;;  %v932_v63 = vld [vmem:[#allocation5 + $0x2] ss:$0 sm:$0xff] }
 0x578   :  { %1052 = vmatpush3.bf16.msra.mxu0 %v468_v52  ;;  %v1177_v52 = vld [vmem:[#allocation7 + $0x10] sm:$0xff]  }
 0x579   :  { %1061 = vmatprep.subr.bf16.mxu0 %v1332_v15 }
 0x57b   :  { %1054 = vmatmul.mubr.msk.bf16.vlgmr.msra.gmra.mrb[4].mxu0 %vm364_vm4, %v454_v59 }
 0x57c   :  { %1057 = vmatprep.mubr.msk.bf16.mxu0 %vm364_vm4, %v455_v61  ;;  %1062 = vmatpush3.bf16.msra.mxu0 %v1175_v4 }
 0x57d   :  { %1063 = vmatprep.subr.bf16.mxu0 %v1332_v15 }
 0x580   :  { %1064 = vmatpush3.bf16.msra.mxu0 %v1176_v5  ;;  %v933_v5 = vld [vmem:[#allocation5 + $0x3] ss:$0 sm:$0xff] }
 0x581   :  { %1069 = vmatprep.subr.bf16.mxu0 %v1332_v15 }
 0x583   :  { %1058 = vmatmul.mubr.msk.bf16.gmra.mrb[8].mxu0 %vm364_vm4, %v456_v3 }
 0x584   :  { %1065 = vmatprep.mubr.msk.bf16.mxu0 %vm1333_vm1, %v1332_v15 }
 0x64e   :  { %v1055_v6 = vpop.f32.mrb[4].mxu0 }
 0x64f   :  { %v519_v7 = vpop.f32.mrb[5].mxu0 }
 0x650   :  { %v1056_v8 = vpop.f32.mrb[6].mxu0 }
 0x651   :  { %v1158_v9 = vpack.i.bf16 %v1056_v8, %v1055_v6  ;;  %v522_v10 = vpop.f32.mrb[7].mxu0 }
 0x653   :  { %1159 = vrot.lane.b32.xlu0 %v1158_v9, %s1328_s7 }
 0x656   :  { %v1059_v11 = vpop.f32.mrb[8].mxu0 }
 0x657   :  { %v535_v12 = vpop.f32.mrb[9].mxu0 }
 0x658   :  { %v1060_v13 = vpop.f32.mrb[10].mxu0 }
 0x659   :  { %v1168_v14 = vpack.i.bf16 %v1060_v13, %v1059_v11  ;;  %v538_v16 = vpop.f32.mrb[11].mxu0  ;;  %v1180_v11 = vld [vmem:[#allocation7 + $0x28] sm:$0xff]   ;;  %v1182_v13 = vld [vmem:[#allocation7 + $0x38] sm:$0xff]  }
 0x65a   :  { %v1163_v17 = vpack.i.bf16 %v538_v16, %v535_v12  ;;  %v1181_v12 = vld [vmem:[#allocation7 + $0x30] sm:$0xff]   ;;  %v1184_v16 = vld [vmem:[#allocation7 + $0x48] sm:$0xff]  }
 0x65b   :  { %1169 = vrot.lane.b32.xlu0 %v1168_v14, %s1339_s27  ;;  %v1183_v14 = vld [vmem:[#allocation7 + $0x40] sm:$0xff]  }
 0x65c   :  { %1164 = vrot.lane.b32.xlu1 %v1163_v17, %s1340_s28  ;;  %v1185_v17 = vld [vmem:[#allocation7 + $0x50] sm:$0xff]  }
 0x6c5   :  { %v1160_v18 = vpop.permute.xlu0 %1159 }
 0x6c6   :  { %v1162_v19 = vunpack.i.h.bf16 %v1160_v18  ;;  %v1161_v20 = vunpack.i.l.bf16 %v1160_v18  ;;  %v1186_v18 = vld [vmem:[#allocation7 + $0x58] sm:$0xff]  }
 0x6c8   :  { %v574_v25 = vsel %vm226_vm2, %v519_v7, %v1161_v20  ;;  %v575_v26 = vsel %vm226_vm2, %v522_v10, %v1162_v19  ;;  %v1179_v10 = vld [vmem:[#allocation7 + $0x20] sm:$0xff]   ;;  %v934_v19 = vld [vmem:[#allocation5 + $0x6] ss:$0 sm:$0xff] }
 0x6c9   :  { %1078 = vmatpush3.bf16.msra.mxu1 %v1179_v10 }
 0x6ca   :  { %1079 = vmatprep.subr.bf16.mxu1 %v1332_v15 }
 0x6cd   :  { %v1170_v21 = vpop.permute.xlu0 %1169  ;;  %1080 = vmatpush3.bf16.msra.mxu1 %v1180_v11 }
 0x6ce   :  { %v1165_v22 = vpop.permute.xlu1 %1164  ;;  %v1172_v27 = vunpack.i.h.bf16 %v1170_v21  ;;  %v1171_v28 = vunpack.i.l.bf16 %v1170_v21  ;;  %1081 = vmatprep.subr.bf16.mxu1 %v1332_v15 }
 0x6cf   :  { %v1167_v23 = vunpack.i.h.bf16 %v1165_v22  ;;  %v1166_v24 = vunpack.i.l.bf16 %v1165_v22 }
 0x6d1   :  { %v578_v29 = vsel %vm576_vm5, %v575_v26, %v1167_v23  ;;  %v577_v30 = vsel %vm576_vm5, %v574_v25, %v1166_v24  ;;  %1082 = vmatpush3.bf16.msra.mxu1 %v1181_v12 }
 0x6d2   :  { %v581_v31 = vsel %vm579_vm6, %v578_v29, %v1172_v27  ;;  %v580_v32 = vsel %vm579_vm6, %v577_v30, %v1171_v28  ;;  %1083 = vmatprep.subr.bf16.mxu1 %v1332_v15 }
 0x6d3   :  { %v582_v33 = vpack.c.bf16 %v581_v31, %v580_v32 }
 0x6d5   :  { %1066 = vmatmul.mubr.msk.bf16.vlgmr.msra.gmra.mrb[12].mxu0 %vm65_vm0, %v582_v33  ;;  %1084 = vmatpush3.bf16.msra.mxu1 %v1182_v13 }
 0x6d6   :  { %1073 = vmatprep.mubr.msk.bf16.mxu0 %vm1333_vm1, %v1332_v15  ;;  %1070 = vmatpush3.bf16.msra.mxu0 %v1177_v52 }
 0x6d7   :  { %1071 = vmatprep.subr.bf16.mxu0 %v1332_v15  ;;  %1085 = vmatprep.subr.bf16.mxu1 %v1332_v15 }
 0x6d9   :  { %1086 = vmatpush3.bf16.msra.mxu1 %v1183_v14 }
 0x6da   :  { %1072 = vmatpush3.bf16.msra.mxu0 %v1178_v53  ;;  %1087 = vmatprep.subr.bf16.mxu1 %v1332_v15 }
 0x6dd   :  { %1088 = vmatpush3.bf16.msra.mxu1 %v1184_v16 }
 0x6de   :  { %1089 = vmatprep.subr.bf16.mxu1 %v1332_v15 }
 0x6e1   :  { %1090 = vmatpush3.bf16.msra.mxu1 %v1185_v17 }
 0x6e2   :  { %1091 = vmatprep.subr.bf16.mxu1 %v1332_v15 }
 0x6e5   :  { %1092 = vmatpush3.bf16.msra.mxu1 %v1186_v18 }
 0x7a8   :  { %v640_v35 = vpop.f32.mrb[12].mxu0 }
 0x7a9   :  { %v641_v37 = vadd.f32 %v928_v34, %v640_v35  ;;  %v1067_v42 = vpop.f32.mrb[13].mxu0 }
 0x7aa   :  { %v643_v43 = vpop.f32.mrb[14].mxu0 }
 0x7ab   :  { %v1548_v38 = vadd.f32 %v641_v37, %v1408_v0  ;;  %v644_v40 = vadd.f32 %v928_v34, %v643_v43  ;;  %v1068_v41 = vpop.f32.mrb[15].mxu0 }
 0x7ad   :  { %v1551_v46 = vadd.f32 %v644_v40, %v1410_v1  ;;  %v649_v50 = vsel %vm65_vm0, %v1548_v38, 0.0 }
 0x7ae   :  { %650 = vadd.xlane.f32.xlu1 %v649_v50 }
 0x7af   :  { %v652_v44 = vsel %vm65_vm0, %v1551_v46, 0.0 }
 0x7b0   :  { %653 = vadd.xlane.f32.xlu0 %v652_v44 }
 0x83b   :  { %v651_v47 = vpop.xlane.xlu1 %650 }
 0x83c   :  { %v655_v45 = vmul.f32 0.03125, %v651_v47 }
 0x83d   :  { %v654_v36 = vpop.xlane.xlu0 %653 }
 0x83e   :  { %v657_v39 = vsub.f32 %v1548_v38, %v655_v45  ;;  %v656_v0 = vmul.f32 0.03125, %v654_v36  ;;  %v938_v45 = vld [vmem:[#allocation5 + $0x7] ss:$0 sm:$0xff] }
 0x840   :  { %v658_v54 = vsub.f32 %v1551_v46, %v656_v0  ;;  %v659_v48 = vmul.f32 %v657_v39, %v657_v39 }
 0x842   :  { %v661_v1 = vsel %vm65_vm0, %v659_v48, 0.0  ;;  %v660_v49 = vmul.f32 %v658_v54, %v658_v54 }
 0x843   :  { %662 = vadd.xlane.f32.xlu0 %v661_v1 }
 0x844   :  { %v664_v51 = vsel %vm65_vm0, %v660_v49, 0.0 }
 0x847   :  { %665 = vadd.xlane.f32.xlu0 %v664_v51 }
 0x8d0   :  { %v663_v55 = vpop.xlane.xlu0 %662 }
 0x8d1   :  { %v667_v56 = vmul.f32 0.03125, %v663_v55 }
 0x8d3   :  { %v669_v57 = vadd.f32 1e-05, %v667_v56 }
 0x8d4   :  { %v666_v58 = vpop.xlane.xlu0 %665 }
 0x8d5   :  { %1223 = vrsqrt.f32 %v669_v57  ;;  %v668_v59 = vmul.f32 0.03125, %v666_v58 }
 0x8d7   :  { %v670_v60 = vadd.f32 1e-05, %v668_v59 }
 0x8d9   :  { %1225 = vrsqrt.f32 %v670_v60 }
 0x8df   :  { %v1224_v61 = vpop.eup %1223 }
 0x8e0   :  { %v673_v62 = vmul.f32 %v1224_v61, %v657_v39 }
 0x8e2   :  { %v679_v3 = vmul.f32 %v932_v63, %v673_v62 }
 0x8e3   :  { %v1226_v2 = vpop.eup %1225 }
 0x8e4   :  { %v674_v4 = vmul.f32 %v1226_v2, %v658_v54  ;;  %v685_v7 = vadd.f32 %v933_v5, %v679_v3 }
 0x8e6   :  { %v680_v6 = vmul.f32 %v932_v63, %v674_v4 }
 0x8e8   :  { %v686_v8 = vadd.f32 %v933_v5, %v680_v6 }
 0x8ea   :  { %v687_v9 = vpack.c.bf16 %v686_v8, %v685_v7 }
 0x8ec   :  { %1074 = vmatmul.mubr.msk.bf16.vlgmr.msra.gmra.mrb[16].mxu0 %vm65_vm0, %v687_v9 }
 0x9bf   :  { %v745_v20 = vpop.f32.mrb[16].mxu0 }
 0x9c0   :  { %v746_v21 = vadd.f32 %v934_v19, %v745_v20  ;;  %v1075_v22 = vpop.f32.mrb[17].mxu0 }
 0x9c1   :  { %v748_v23 = vpop.f32.mrb[18].mxu0 }
 0x9c2   :  { %v754_v24 = vmul.f32 0.044715, %v746_v21  ;;  %v749_v25 = vadd.f32 %v934_v19, %v748_v23  ;;  %v1076_v26 = vpop.f32.mrb[19].mxu0  ;;  %v752_v43 = vmul.f32 0.5, %v746_v21 }
 0x9c4   :  { %v756_v27 = vmul.f32 %v754_v24, %v746_v21  ;;  %v755_v28 = vmul.f32 0.044715, %v749_v25  ;;  %v753_v40 = vmul.f32 0.5, %v749_v25 }
 0x9c6   :  { %v758_v29 = vmul.f32 %v756_v27, %v746_v21  ;;  %v757_v30 = vmul.f32 %v755_v28, %v749_v25 }
 0x9c8   :  { %v760_v31 = vadd.f32 %v758_v29, %v746_v21  ;;  %v759_v32 = vmul.f32 %v757_v30, %v749_v25 }
 0x9ca   :  { %v762_v33 = vmul.f32 0.7978846, %v760_v31  ;;  %v761_v34 = vadd.f32 %v759_v32, %v749_v25 }
 0x9cc   :  { %1227 = vtanh.f32 %v762_v33  ;;  %v763_v35 = vmul.f32 0.7978846, %v761_v34 }
 0x9ce   :  { %1229 = vtanh.f32 %v763_v35 }
 0x9d6   :  { %v1228_v15 = vpop.eup %1227 }
 0x9d7   :  { %v766_v37 = vadd.f32 1.0, %v1228_v15 }
 0x9d8   :  { %v1230_v42 = vpop.eup %1229 }
 0x9d9   :  { %v767_v41 = vadd.f32 1.0, %v1230_v42  ;;  %v768_v50 = vmul.f32 %v766_v37, %v752_v43 }
 0x9db   :  { %v769_v44 = vmul.f32 %v767_v41, %v753_v40 }
 0x9dd   :  { %v770_v47 = vpack.c.bf16 %v769_v44, %v768_v50 }
 0x9df   :  { %1094 = vmatmul.mubr.bf16.vlgmr.msra.gmra.mrb[8].mxu1 %v770_v47 }
 0xab2   :  { %v873_v36 = vpop.f32.mrb[8].mxu1 }
 0xab3   :  { %v874_v39 = vadd.f32 %v938_v45, %v873_v36  ;;  %v1095_v0 = vpop.f32.mrb[9].mxu1 }
 0xab4   :  { %v876_v54 = vpop.f32.mrb[10].mxu1 }
 0xab5   :  { %v880_v48 = vadd.f32 %v874_v39, %v1548_v38  ;;  %v877_v1 = vadd.f32 %v938_v45, %v876_v54  ;;  %v1096_v49 = vpop.f32.mrb[11].mxu1 }
 0xab7   :  { %882 = vst.msk [vmem:[#allocation8] sm:$0xff] %vm65_vm0, %v880_v48  ;;  %v881_v51 = vadd.f32 %v877_v1, %v1551_v46 }
 0xab9   :  { %883 = vst.msk [vmem:[#allocation8 + $0x8] sm:$0xff] %vm65_vm0, %v881_v51 }
 0xaba   :  { %1308 = shalt.err (!%p1305_p0)
}
 0xabb   :  { %s1309_s8 = scalar_lea.hbm %s1592_s3, 256 }
 0xabc   :  { %p1310_p1 = scmp.ne.s32.totalorder %s1592_s3, %s1309_s8  ;;  %p1313_p2 = scmp.lt.u32.totalorder %s1309_s8, %s1592_s3 }
 0xabe   :  { %p1315_p3 = pnand %p1313_p2, %p1310_p1 }
 0xac0   :  { %1318 = shalt.err (!%p1315_p3)
}
 0xac1   :  { %895 = dma.vmem_to_hbm [thread:$0]  %s890_s30, 256, %s1592_s3, [#allocation4], %s1327_s1, %s1327_s1, %s1328_s7  }
 0xac2   :  { %1323 = dma.done.wait [#allocation4], 256  }
 0xac3   :  { %1324 = vsyncadd [#allocation4], 4294967040 }
 0xac4   :  { %899 = vsyncpa [#allocation3], 1 }
 0xac5   :  { %900 = vsyncpa [#allocation6], 1 }
 0xac6   :  { %901 = vsyncpa [#allocation4], 1 }

</bundles_post_ra>
